<compile_context>
chip_gen: v6e
topology: v6e:2x2x1
jax: 0.10.0
libtpu: 0.0.40
codegen_flags: <defaults>
</compile_context>

<pallas_src>
import functools

import jax
import jax.numpy as jnp
from jax.experimental import pallas as pl
from jax.experimental.pallas import tpu as pltpu

LANE = 128  # every (padded) layer dim fits in one lane tile.


# ------------------------------ kernel ------------------------------
def make_kernel(n_layers, relu_flags, d_n, d_m):
    """Fused MLP kernel.

    Refs: xn_ref    (TILE_M, d_n)          — node inputs (streamed)
          xm_ref    (TILE_M, d_m)          — material inputs (streamed)
          w_ref     (n_layers*LANE, LANE)  — packed bf16 weights (resident)
          b_ref     (n_layers, LANE)       — packed f32 biases (resident)
          o_ref     (TILE_M, LANE)         — lane-dense output (first ndof cols valid)
          x_scratch (TILE_M, LANE)         — VMEM scratch for the padded activation
    """
    d_in = d_n + d_m

    def kernel(xn_ref, xm_ref, w_ref, b_ref, o_ref, x_scratch):
        # Assemble the 128-lane activation in VMEM. Lanes >= d_in multiply
        # all-zero weight rows, so they only need to be finite -> zero them.
        x_scratch[...] = jnp.zeros_like(x_scratch)
        x_scratch[:, :d_n] = xn_ref[...]
        x_scratch[:, d_n:d_in] = xm_ref[...]
        z = x_scratch[...]                              # f32 (TILE_M, LANE)

        # TODO(synk): v5e-only half-M software pipelining (interleave MXU of
        # one M-half with the VPU bias+ReLU of the other) is not implemented.
        for l in range(n_layers):
            w = w_ref[l * LANE:(l + 1) * LANE, :]       # (LANE, LANE) bf16, static slice
            b = b_ref[l:l + 1, :]                       # (1, LANE) f32
            z = jnp.dot(z.astype(jnp.bfloat16), w,
                        preferred_element_type=jnp.float32) + b
            if relu_flags[l]:
                z = jnp.maximum(z, 0.0)
        o_ref[...] = z.astype(o_ref.dtype)

    return kernel


# ------------------------------ wrapper ------------------------------
def _pick_tile_m(m, tile_m_max):
    """Largest power-of-two multiple of 128 <= tile_m_max that still gives a
    grid of >= 2 steps when the batch allows (v7x has 2 TensorCores)."""
    tile_m = max(128, (tile_m_max // 128) * 128)
    while tile_m > 128 and pl.cdiv(m, tile_m) < 2:
        tile_m //= 2
    return tile_m


def beam_forward_pallas(x_nodes, x_materials, w_packed, b_packed, *,
                        ndof, relu_flags, tile_m=512):
    """Batched forward: row m of the output is the module forward for
    (x_nodes[m], x_materials[m])."""
    assert x_nodes.ndim == 2 and x_materials.ndim == 2
    m = x_nodes.shape[0]
    assert x_materials.shape[0] == m
    d_n = x_nodes.shape[1]
    d_m = x_materials.shape[1]
    assert d_n + d_m <= LANE, "input dims wider than one lane tile"
    n_layers = len(relu_flags)

    tile_m = _pick_tile_m(m, tile_m)
    grid_m = pl.cdiv(m, tile_m)
    m_pad = grid_m * tile_m

    # Only the narrow (d_n / d_m wide) inputs are row-padded when needed — no
    # wrapper-side 128-lane activation is ever materialized in HBM.
    xn = x_nodes.astype(jnp.float32)
    xm = x_materials.astype(jnp.float32)
    if m_pad != m:
        xn = jnp.pad(xn, ((0, m_pad - m), (0, 0)))
        xm = jnp.pad(xm, ((0, m_pad - m), (0, 0)))

    flops = 2 * m_pad * LANE * LANE * n_layers
    bytes_accessed = (xn.size * 4 + xm.size * 4 + w_packed.size * 2 +
                      b_packed.size * 4 + m_pad * LANE * 4)

    out = pl.pallas_call(
        make_kernel(n_layers, relu_flags, d_n, d_m),
        out_shape=jax.ShapeDtypeStruct((m_pad, LANE), jnp.float32),
        grid=(grid_m,),
        in_specs=[
            pl.BlockSpec((tile_m, d_n), lambda i: (i, 0)),            # streamed
            pl.BlockSpec((tile_m, d_m), lambda i: (i, 0)),            # streamed
            # Constant index_map -> DMA'd once, VMEM-resident across the grid.
            pl.BlockSpec((n_layers * LANE, LANE), lambda i: (0, 0)),  # bf16 weights
            pl.BlockSpec((n_layers, LANE), lambda i: (0, 0)),         # f32 biases
        ],
        out_specs=pl.BlockSpec((tile_m, LANE), lambda i: (i, 0)),
        scratch_shapes=[pltpu.VMEM((tile_m, LANE), jnp.float32)],
        compiler_params=pltpu.CompilerParams(
            dimension_semantics=("parallel",)),
        cost_estimate=pl.CostEstimate(flops=flops, transcendentals=0,
                                      bytes_accessed=bytes_accessed),
    )(xn, xm, w_packed, b_packed)
    return out[:m, :ndof]


# -------------------- deterministic parameter construction --------------------
def init_linear(key, in_dim, out_dim):
    """Mimics nn.Linear uniform(-1/sqrt(in), 1/sqrt(in)) init.
    Weight stored transposed: (in_dim, out_dim). Bias: (out_dim,)."""
    k_w, k_b = jax.random.split(key)
    bound = 1.0 / float(in_dim) ** 0.5
    w = jax.random.uniform(k_w, (in_dim, out_dim), jnp.float32, -bound, bound)
    b = jax.random.uniform(k_b, (out_dim,), jnp.float32, -bound, bound)
    return w, b


def build_params(key, input_dim_nodes, input_dim_materials,
                 nodes_layers, material_layers, final_layers, ndof):
    keys = iter(jax.random.split(key, 64))

    node_dims = [input_dim_nodes] + list(nodes_layers) + [ndof]
    node_params = [init_linear(next(keys), node_dims[i], node_dims[i + 1])
                   for i in range(len(node_dims) - 1)]

    mat_dims = [input_dim_materials] + list(material_layers) + [ndof]
    mat_params = [init_linear(next(keys), mat_dims[i], mat_dims[i + 1])
                  for i in range(len(mat_dims) - 1)]

    final_in = init_linear(next(keys), ndof * 2, final_layers[0])
    final_hidden = [init_linear(next(keys), final_layers[i], final_layers[i + 1])
                    for i in range(len(final_layers) - 1)]
    final_out = init_linear(next(keys), final_layers[-1], ndof)

    return node_params, mat_params, final_in, final_hidden, final_out


def build_fused_layers(node_params, mat_params, final_in, final_hidden, final_out):
    """Fuse node/material branches into block-diagonal levels, then append the
    final stack. Returns a list of (W[in,out], b[out], relu_flag)."""
    # TODO(synk): branches of unequal depth would need identity-padding of the
    # shorter branch; the module as parameterized here has equal depths.
    assert len(node_params) == len(mat_params)
    depth = len(node_params)
    layers = []
    for i in range(depth):
        wn, bn = node_params[i]
        wm, bm = mat_params[i]
        kn, on = wn.shape
        km, om = wm.shape
        w = jnp.zeros((kn + km, on + om), jnp.float32)
        w = w.at[:kn, :on].set(wn).at[kn:, on:].set(wm)
        b = jnp.concatenate([bn, bm])
        layers.append((w, b, i < depth - 1))          # no ReLU after *_out level
    w_fin, b_fin = final_in
    layers.append((w_fin, b_fin, True))
    for w, b in final_hidden:
        layers.append((w, b, True))
    w_out, b_out = final_out
    layers.append((w_out, b_out, False))
    return layers


def pack_layers(layers):
    """Zero-pad each layer to (LANE, LANE) and pack into one bf16 weight slab
    plus one f32 bias slab; also return the per-layer relu flags."""
    n_layers = len(layers)
    w_packed = jnp.zeros((n_layers * LANE, LANE), jnp.float32)
    b_packed = jnp.zeros((n_layers, LANE), jnp.float32)
    relu_flags = []
    for l, (w, b, relu) in enumerate(layers):
        k, n = w.shape
        assert k <= LANE and n <= LANE, "layer wider than one lane tile"
        w_packed = w_packed.at[l * LANE:l * LANE + k, :n].set(w)
        b_packed = b_packed.at[l, :n].set(b)
        relu_flags.append(relu)
    return w_packed.astype(jnp.bfloat16), b_packed, tuple(relu_flags)


# -------------------- pure-JAX references (correctness checks) --------------------
def _mm_f32(a, w):
    return a @ w


def _mm_bf16(a, w):
    return jnp.dot(a.astype(jnp.bfloat16), w.astype(jnp.bfloat16),
                   preferred_element_type=jnp.float32)


def ref_forward(x_nodes, x_materials, node_params, mat_params,
                final_in, final_hidden, final_out, mm=_mm_f32):
    """Batched reference: applies the original per-branch layers row-wise.
    (torch.cat(dim=0) on 1-D vectors == concat along the feature axis here.)"""
    z_n = x_nodes
    for i, (w, b) in enumerate(node_params):
        z_n = mm(z_n, w) + b[None, :]
        if i < len(node_params) - 1:
            z_n = jnp.maximum(z_n, 0.0)
    z_m = x_materials
    for i, (w, b) in enumerate(mat_params):
        z_m = mm(z_m, w) + b[None, :]
        if i < len(mat_params) - 1:
            z_m = jnp.maximum(z_m, 0.0)
    w_fin, b_fin = final_in
    z = jnp.maximum(mm(jnp.concatenate([z_n, z_m], axis=-1), w_fin)
                    + b_fin[None, :], 0.0)
    for w, b in final_hidden:
        z = jnp.maximum(mm(z, w) + b[None, :], 0.0)
    w_out, b_out = final_out
    return mm(z, w_out) + b_out[None, :]


if __name__ == "__main__":
    # Small shapes consistent with the module's constructor.
    input_dim_nodes = 8
    input_dim_materials = 4
    nodes_layers = [32, 32]
    material_layers = [32, 32]
    final_layers = [32, 32]
    ndof = 16
    batch = 256          # -> tile_m auto-shrinks to 128 => grid of 2 (both v7x TCs)

    key = jax.random.PRNGKey(0)
    k_params, k_xn, k_xm = jax.random.split(key, 3)

    node_params, mat_params, final_in, final_hidden, final_out = build_params(
        k_params, input_dim_nodes, input_dim_materials,
        nodes_layers, material_layers, final_layers, ndof)

    fused = build_fused_layers(node_params, mat_params, final_in,
                               final_hidden, final_out)
    w_packed, b_packed, relu_flags = pack_layers(fused)

    x_nodes = jax.random.normal(k_xn, (batch, input_dim_nodes), jnp.float32)
    x_materials = jax.random.normal(k_xm, (batch, input_dim_materials), jnp.float32)

    fwd = functools.partial(beam_forward_pallas, ndof=ndof,
                            relu_flags=relu_flags, tile_m=512)
    out = jax.block_until_ready(fwd(x_nodes, x_materials, w_packed, b_packed))
    assert out.shape == (batch, ndof), out.shape

    # Tight check vs a mixed-precision reference (bf16 matmuls, f32 accumulate)
    # that matches what the kernel computes.
    expected_bf16 = ref_forward(x_nodes, x_materials, node_params, mat_params,
                                final_in, final_hidden, final_out, mm=_mm_bf16)
    assert jnp.allclose(out, expected_bf16, atol=5e-3, rtol=5e-3), (
        float(jnp.max(jnp.abs(out - expected_bf16))))

    # Loose semantics check vs the full-f32 module forward (bf16 weight cast
    # introduces ~1% deviation, per the review's expectation).
    expected_f32 = ref_forward(x_nodes, x_materials, node_params, mat_params,
                               final_in, final_hidden, final_out, mm=_mm_f32)
    assert jnp.allclose(out, expected_f32, atol=6e-2, rtol=6e-2), (
        float(jnp.max(jnp.abs(out - expected_f32))))

    print("KERNEL_OK")
</pallas_src>

<mosaic_0001>
module attributes {stable_mosaic.version = 11 : i64} {
  func.func @kernel(%arg0: i32, %arg1: memref<128x8xf32, #tpu.memory_space<vmem>>, %arg2: memref<128x4xf32, #tpu.memory_space<vmem>>, %arg3: memref<768x128xbf16, #tpu.memory_space<vmem>>, %arg4: memref<6x128xf32, #tpu.memory_space<vmem>>, %arg5: memref<128x128xf32, #tpu.memory_space<vmem>>, %arg6: memref<128x128xf32, #tpu.memory_space<vmem>>) attributes {dimension_semantics = [#tpu.dimension_semantics<parallel>], iteration_bounds = array<i64: 2>, scalar_prefetch = 0 : i64, scratch_operands = 1 : i64, tpu.core_type = #tpu.core_type<tc>, window_params = [{transform_indices = @transform_0, window_bounds = array<i64: 128, 8>}, {transform_indices = @transform_1, window_bounds = array<i64: 128, 4>}, {pipeline_mode = #tpu.pipeline_mode<synchronous>, transform_indices = @transform_2, window_bounds = array<i64: 768, 128>}, {pipeline_mode = #tpu.pipeline_mode<synchronous>, transform_indices = @transform_3, window_bounds = array<i64: 6, 128>}, {transform_indices = @transform_4, window_bounds = array<i64: 128, 128>}]} {
    %cst = arith.constant 0.000000e+00 : f32
    %0 = vector.broadcast %cst : f32 to vector<128x128xf32>
    %c0 = arith.constant 0 : index
    %c0_0 = arith.constant 0 : index
    %1 = vector.load %arg6[%c0, %c0_0] : memref<128x128xf32, #tpu.memory_space<vmem>>, vector<128x128xf32>
    tpu.vector_store %arg6[%c0, %c0_0], %0 {strides = array<i32>} : memref<128x128xf32, #tpu.memory_space<vmem>>, vector<128x128xf32>,
    %c0_1 = arith.constant 0 : index
    %c0_2 = arith.constant 0 : index
    %2 = vector.load %arg1[%c0_1, %c0_2] : memref<128x8xf32, #tpu.memory_space<vmem>>, vector<128x8xf32>
    %c0_3 = arith.constant 0 : index
    %c0_4 = arith.constant 0 : index
    %3 = vector.load %arg6[%c0_3, %c0_4] : memref<128x128xf32, #tpu.memory_space<vmem>>, vector<128x8xf32>
    tpu.vector_store %arg6[%c0_3, %c0_4], %2 {strides = array<i32>} : memref<128x128xf32, #tpu.memory_space<vmem>>, vector<128x8xf32>,
    %c0_5 = arith.constant 0 : index
    %c0_6 = arith.constant 0 : index
    %4 = vector.load %arg2[%c0_5, %c0_6] : memref<128x4xf32, #tpu.memory_space<vmem>>, vector<128x4xf32>
    %c0_7 = arith.constant 0 : index
    %c8 = arith.constant 8 : index
    %5 = vector.load %arg6[%c0_7, %c8] : memref<128x128xf32, #tpu.memory_space<vmem>>, vector<128x4xf32>
    tpu.vector_store %arg6[%c0_7, %c8], %4 {strides = array<i32>} : memref<128x128xf32, #tpu.memory_space<vmem>>, vector<128x4xf32>,
    %c0_8 = arith.constant 0 : index
    %c0_9 = arith.constant 0 : index
    %6 = vector.load %arg6[%c0_8, %c0_9] : memref<128x128xf32, #tpu.memory_space<vmem>>, vector<128x128xf32>
    %c0_10 = arith.constant 0 : index
    %c0_11 = arith.constant 0 : index
    %7 = vector.load %arg3[%c0_10, %c0_11] : memref<768x128xbf16, #tpu.memory_space<vmem>>, vector<128x128xbf16>
    %c0_12 = arith.constant 0 : index
    %c0_13 = arith.constant 0 : index
    %8 = vector.load %arg4[%c0_12, %c0_13] : memref<6x128xf32, #tpu.memory_space<vmem>>, vector<1x128xf32>
    %9 = arith.truncf %6 : vector<128x128xf32> to vector<128x128xbf16>
    %cst_14 = arith.constant dense<0.000000e+00> : vector<128x128xf32>
    %10 = tpu.matmul %9, %7, %cst_14 {dimension_numbers = #tpu.dot_dimension_numbers<[1], [0], [0], [1], [0, 0, 1, 1], [], []>} : vector<128x128xbf16>, vector<128x128xbf16>, vector<128x128xf32> -> vector<128x128xf32>
    %11 = vector.broadcast %8 : vector<1x128xf32> to vector<128x128xf32>
    %12 = arith.addf %10, %11 : vector<128x128xf32>
    %cst_15 = arith.constant 0.000000e+00 : f32
    %13 = vector.broadcast %cst_15 : f32 to vector<128x128xf32>
    %14 = arith.maximumf %12, %13 : vector<128x128xf32>
    %c128 = arith.constant 128 : index
    %c0_16 = arith.constant 0 : index
    %15 = vector.load %arg3[%c128, %c0_16] : memref<768x128xbf16, #tpu.memory_space<vmem>>, vector<128x128xbf16>
    %c1 = arith.constant 1 : index
    %c0_17 = arith.constant 0 : index
    %16 = vector.load %arg4[%c1, %c0_17] : memref<6x128xf32, #tpu.memory_space<vmem>>, vector<1x128xf32>
    %17 = arith.truncf %14 : vector<128x128xf32> to vector<128x128xbf16>
    %cst_18 = arith.constant dense<0.000000e+00> : vector<128x128xf32>
    %18 = tpu.matmul %17, %15, %cst_18 {dimension_numbers = #tpu.dot_dimension_numbers<[1], [0], [0], [1], [0, 0, 1, 1], [], []>} : vector<128x128xbf16>, vector<128x128xbf16>, vector<128x128xf32> -> vector<128x128xf32>
    %19 = vector.broadcast %16 : vector<1x128xf32> to vector<128x128xf32>
    %20 = arith.addf %18, %19 : vector<128x128xf32>
    %cst_19 = arith.constant 0.000000e+00 : f32
    %21 = vector.broadcast %cst_19 : f32 to vector<128x128xf32>
    %22 = arith.maximumf %20, %21 : vector<128x128xf32>
    %c256 = arith.constant 256 : index
    %c0_20 = arith.constant 0 : index
    %23 = vector.load %arg3[%c256, %c0_20] : memref<768x128xbf16, #tpu.memory_space<vmem>>, vector<128x128xbf16>
    %c2 = arith.constant 2 : index
    %c0_21 = arith.constant 0 : index
    %24 = vector.load %arg4[%c2, %c0_21] : memref<6x128xf32, #tpu.memory_space<vmem>>, vector<1x128xf32>
    %25 = arith.truncf %22 : vector<128x128xf32> to vector<128x128xbf16>
    %cst_22 = arith.constant dense<0.000000e+00> : vector<128x128xf32>
    %26 = tpu.matmul %25, %23, %cst_22 {dimension_numbers = #tpu.dot_dimension_numbers<[1], [0], [0], [1], [0, 0, 1, 1], [], []>} : vector<128x128xbf16>, vector<128x128xbf16>, vector<128x128xf32> -> vector<128x128xf32>
    %27 = vector.broadcast %24 : vector<1x128xf32> to vector<128x128xf32>
    %28 = arith.addf %26, %27 : vector<128x128xf32>
    %c384 = arith.constant 384 : index
    %c0_23 = arith.constant 0 : index
    %29 = vector.load %arg3[%c384, %c0_23] : memref<768x128xbf16, #tpu.memory_space<vmem>>, vector<128x128xbf16>
    %c3 = arith.constant 3 : index
    %c0_24 = arith.constant 0 : index
    %30 = vector.load %arg4[%c3, %c0_24] : memref<6x128xf32, #tpu.memory_space<vmem>>, vector<1x128xf32>
    %31 = arith.truncf %28 : vector<128x128xf32> to vector<128x128xbf16>
    %cst_25 = arith.constant dense<0.000000e+00> : vector<128x128xf32>
    %32 = tpu.matmul %31, %29, %cst_25 {dimension_numbers = #tpu.dot_dimension_numbers<[1], [0], [0], [1], [0, 0, 1, 1], [], []>} : vector<128x128xbf16>, vector<128x128xbf16>, vector<128x128xf32> -> vector<128x128xf32>
    %33 = vector.broadcast %30 : vector<1x128xf32> to vector<128x128xf32>
    %34 = arith.addf %32, %33 : vector<128x128xf32>
    %cst_26 = arith.constant 0.000000e+00 : f32
    %35 = vector.broadcast %cst_26 : f32 to vector<128x128xf32>
    %36 = arith.maximumf %34, %35 : vector<128x128xf32>
    %c512 = arith.constant 512 : index
    %c0_27 = arith.constant 0 : index
    %37 = vector.load %arg3[%c512, %c0_27] : memref<768x128xbf16, #tpu.memory_space<vmem>>, vector<128x128xbf16>
    %c4 = arith.constant 4 : index
    %c0_28 = arith.constant 0 : index
    %38 = vector.load %arg4[%c4, %c0_28] : memref<6x128xf32, #tpu.memory_space<vmem>>, vector<1x128xf32>
    %39 = arith.truncf %36 : vector<128x128xf32> to vector<128x128xbf16>
    %cst_29 = arith.constant dense<0.000000e+00> : vector<128x128xf32>
    %40 = tpu.matmul %39, %37, %cst_29 {dimension_numbers = #tpu.dot_dimension_numbers<[1], [0], [0], [1], [0, 0, 1, 1], [], []>} : vector<128x128xbf16>, vector<128x128xbf16>, vector<128x128xf32> -> vector<128x128xf32>
    %41 = vector.broadcast %38 : vector<1x128xf32> to vector<128x128xf32>
    %42 = arith.addf %40, %41 : vector<128x128xf32>
    %cst_30 = arith.constant 0.000000e+00 : f32
    %43 = vector.broadcast %cst_30 : f32 to vector<128x128xf32>
    %44 = arith.maximumf %42, %43 : vector<128x128xf32>
    %c640 = arith.constant 640 : index
    %c0_31 = arith.constant 0 : index
    %45 = vector.load %arg3[%c640, %c0_31] : memref<768x128xbf16, #tpu.memory_space<vmem>>, vector<128x128xbf16>
    %c5 = arith.constant 5 : index
    %c0_32 = arith.constant 0 : index
    %46 = vector.load %arg4[%c5, %c0_32] : memref<6x128xf32, #tpu.memory_space<vmem>>, vector<1x128xf32>
    %47 = arith.truncf %44 : vector<128x128xf32> to vector<128x128xbf16>
    %cst_33 = arith.constant dense<0.000000e+00> : vector<128x128xf32>
    %48 = tpu.matmul %47, %45, %cst_33 {dimension_numbers = #tpu.dot_dimension_numbers<[1], [0], [0], [1], [0, 0, 1, 1], [], []>} : vector<128x128xbf16>, vector<128x128xbf16>, vector<128x128xf32> -> vector<128x128xf32>
    %49 = vector.broadcast %46 : vector<1x128xf32> to vector<128x128xf32>
    %50 = arith.addf %48, %49 : vector<128x128xf32>
    %c0_34 = arith.constant 0 : index
    %c0_35 = arith.constant 0 : index
    %51 = vector.load %arg5[%c0_34, %c0_35] : memref<128x128xf32, #tpu.memory_space<vmem>>, vector<128x128xf32>
    tpu.vector_store %arg5[%c0_34, %c0_35], %50 {strides = array<i32>} : memref<128x128xf32, #tpu.memory_space<vmem>>, vector<128x128xf32>,
    return
  }
  func.func @transform_0(%arg0: i32) -> (i32, i32) {
    %c0_i32 = arith.constant 0 : i32
    %c0_i32_0 = arith.constant 0 : i32
    return %arg0, %c0_i32 : i32, i32
  }
  func.func @transform_1(%arg0: i32) -> (i32, i32) {
    %c0_i32 = arith.constant 0 : i32
    %c0_i32_0 = arith.constant 0 : i32
    return %arg0, %c0_i32 : i32, i32
  }
  func.func @transform_2(%arg0: i32) -> (i32, i32) {
    %c0_i32 = arith.constant 0 : i32
    %c0_i32_0 = arith.constant 0 : i32
    %c0_i32_1 = arith.constant 0 : i32
    return %c0_i32, %c0_i32_0 : i32, i32
  }
  func.func @transform_3(%arg0: i32) -> (i32, i32) {
    %c0_i32 = arith.constant 0 : i32
    %c0_i32_0 = arith.constant 0 : i32
    %c0_i32_1 = arith.constant 0 : i32
    return %c0_i32, %c0_i32_0 : i32, i32
  }
  func.func @transform_4(%arg0: i32) -> (i32, i32) {
    %c0_i32 = arith.constant 0 : i32
    %c0_i32_0 = arith.constant 0 : i32
    return %arg0, %c0_i32 : i32, i32
  }
}

</mosaic_0001>

<bundles_post_ra>
// kernel: tpu_custom_call.1
= control target key start
LH: loop header
LB: loop body
LE: loop exit
PB: predicated region body
PF: predicated region fallthrough
CT: control target
= control target key end

     0   :  { %9 = vsyncpa [#allocation4], 0  ;;  %s2511_s0 = inlined_call_operand.vmem [shape: f32[256,8], index: 0, kind: input, shape index: {}]   ;;  %s2512_s1 = inlined_call_operand.vmem [shape: f32[256,4], index: 1, kind: input, shape index: {}]   ;;  %s2513_s2 = inlined_call_operand.vmem [shape: bf16[768,128], index: 2, kind: input, shape index: {}]   ;;  %s2514_s3 = inlined_call_operand.vmem [shape: f32[6,128], index: 3, kind: input, shape index: {}]   ;;  %s2515_s4 = inlined_call_operand.hbm [shape: f32[256,128], index: 4, kind: output, shape index: {}]  }
   0x1   :  { %11 = vsyncpa [#allocation4 + $0x1], 0  ;;  %s2134_s15 = smov 0   ;;  %s2136_s16 = smov 0  }
   0x2   :  { %s2138_s17 = smov 0   ;;  %s2140_s18 = smov 0  }
   0x3 LB: > { %s2155_s19 = sadd.s32 4294967295, %s2103_s18   ;;  %s1596_s20 = sadd.s32 4294967294, %s2103_s18   ;;  %s2103_s18 = sphi %s2140_s18, %s2521_s18   ;;  %s2099_s17 = sphi %s2138_s17, %s2520_s17   ;;  %s2095_s16 = sphi %s2136_s16, %s2519_s16   ;;  %s2091_s15 = sphi %s2134_s15, %s2518_s15  }
   0x4   : > { %s2159_s21 = sadd.s32 1, %s2103_s18   ;;  %s118_s22 = sadd.s32 1, %s2099_s17 }
   0x5   : > { %s115_s23 = ssub.s32 %s2103_s18, %s2159_s21  ;;  %p128_p0 = scmp.ne.s32.totalorder %s2099_s17, %s2095_s16 }
   0x6   : > { %p116_p1 = scmp.eq.s32.totalorder %s115_s23, 0  ;;  %p129_p2 = scmp.eq.s32.totalorder %s2155_s19, 1 }
   0x7   : > { %p134_p3 = scmp.ne.s32.totalorder %s2095_s16, %s2091_s15  ;;  %p135_p4 = scmp.eq.s32.totalorder %s1596_s20, 1 }
   0x8   : > { %s2170_s24 = scalar_select %p116_p1, %s2099_s17, %s118_s22  }
   0x9   : > { %p2172_p5 = por %p129_p2, %p128_p0  ;;  %p2176_p6 = por %p135_p4, %p134_p3 }
   0xa   : > { %p1599_p7 = scmp.ge.s32.totalorder %s2103_s18, 1  ;;  %p177_p8 = scmp.lt.s32.totalorder %s2103_s18, 3 }
   0xc   : > { %p178_p9 = pnand %p1599_p7, %p177_p8 }
   0xd   : > { %s1601_s27 = sshll.u32 (!%p178_p9), %s2155_s19, 4  ;;  %s2106_s12 = smov (!%p178_p9), 8  }
   0xe   : > { %181 = sbr.rel (%p178_p9) target bundleno = 1420 (0x58c), region = 36  ;;  %p209_p10 = scmp.lt.s32.totalorder (!%p178_p9), %s1601_s27, 31 }
   0xf   : > { %s205_s29 = sand.u32 (!%p178_p9), 1, %s2095_s16   ;;  %s1664_s8 = sshll.u32 (!%p178_p9), %s2155_s19, 11 }
  0x10   : > { %s1600_s30 = sshll.u32 (!%p178_p9), %s205_s29, 7  ;;  %s2462_s14 = scalar_lea.hbm (!%p178_p9), %s2515_s4, %s1664_s8 }
  0x11   : > { %s2441_s7 = scalar_lea.vmem (!%p178_p9), [#allocation3], %s1600_s30  ;;  %s2470_s19 = scalar_lea.sflag (!%p178_p9), [#allocation4], %s205_s29 }
  0x12   : > { %s1522_s9 = sshll.u32 (!%p178_p9), %s2441_s7, 4  ;;  %s2465_s9 = int_to_ptr.vmem [resolvable:$true] %s1522_s9 }
  0x13   : > { %v1995_v0 = vld [vmem:[%s2513_s2 + $0x38] sm:$0xff]   ;;  %v1996_v1 = vld [vmem:[%s2513_s2 + $0x30] sm:$0xff]   ;;  %s2523_s27 = smov (!%p209_p10, %s1601_s27), 31  ;;  %v2105_v2 = vmov 0.0   ;;  %v1997_v3 = vld [vmem:[%s2513_s2 + $0x28] sm:$0xff]   ;;  %vm254_vm0 = vcmask 64512  }
  0x14   : > { %1761 = vmatprep.subr.bf16.mxu0 %v1995_v0  ;;  %224 = vst [vmem:[#allocation2 + $0x10] sm:$0xff] %v2105_v2  ;;  %222 = vst [vmem:[#allocation2] sm:$0xff] %v2105_v2  ;;  %s1602_s6 = sshll.u32 %s2523_s27, 3  ;;  %v1998_v8 = vld [vmem:[%s2513_s2 + $0x20] sm:$0xff]   ;;  %v1999_v14 = vld [vmem:[%s2513_s2 + $0x18] sm:$0xff]   ;;  %vm351_vm1 = vcmask 97344  }
  0x15   : > { %223 = vst [vmem:[#allocation2 + $0x8] sm:$0xff] %v2105_v2  ;;  %225 = vst [vmem:[#allocation2 + $0x18] sm:$0xff] %v2105_v2  ;;  %1762 = vmatpush3.bf16.msra.mxu0 %v1995_v0  ;;  %s2198_s11 = scalar_lea.vmem %s2512_s1, %s1602_s6  ;;  %s2209_s20 = scalar_lea.vmem %s2511_s0, %s1602_s6  ;;  %v2000_v20 = vld [vmem:[%s2513_s2 + $0x10] sm:$0xff]   ;;  %v2001_v31 = vld [vmem:[%s2513_s2 + $0x8] sm:$0xff]  }
  0x16   : > { %226 = vst [vmem:[#allocation2 + $0x20] sm:$0xff] %v2105_v2  ;;  %227 = vst [vmem:[#allocation2 + $0x28] sm:$0xff] %v2105_v2  ;;  %1763 = vmatprep.subr.bf16.mxu0 %v1996_v1  ;;  %v273_v4 = vld [vmem:[%s2198_s11 + $0x10] sm:$0xff]  ;;  %v271_v5 = vld [vmem:[%s2198_s11] sm:$0xff] }
  0x17   : > { %228 = vst [vmem:[#allocation2 + $0x30] sm:$0xff] %v2105_v2  ;;  %229 = vst [vmem:[#allocation2 + $0x38] sm:$0xff] %v2105_v2  ;;  %307 = vrot.lane.b32.xlu1 %v273_v4, %s2106_s12  ;;  %303 = vrot.lane.b32.xlu0 %v271_v5, %s2106_s12  ;;  %v274_v6 = vld [vmem:[%s2198_s11 + $0x18] sm:$0xff]  ;;  %v272_v7 = vld [vmem:[%s2198_s11 + $0x8] sm:$0xff] }
  0x18   : > { %230 = vst [vmem:[#allocation2 + $0x40] sm:$0xff] %v2105_v2  ;;  %231 = vst [vmem:[#allocation2 + $0x48] sm:$0xff] %v2105_v2  ;;  %v276_v9 = vld [vmem:[%s2198_s11 + $0x28] sm:$0xff]  ;;  %v275_v10 = vld [vmem:[%s2198_s11 + $0x20] sm:$0xff] }
  0x19   : > { %232 = vst [vmem:[#allocation2 + $0x50] sm:$0xff] %v2105_v2  ;;  %233 = vst [vmem:[#allocation2 + $0x58] sm:$0xff] %v2105_v2  ;;  %1764 = vmatpush3.bf16.msra.mxu0 %v1996_v1  ;;  %v240_v11 = vld [vmem:[%s2209_s20 + $0x10] sm:$0xff]  ;;  %v238_v12 = vld [vmem:[%s2209_s20] sm:$0xff] }
  0x1a   : > { %234 = vst [vmem:[#allocation2 + $0x60] sm:$0xff] %v2105_v2  ;;  %235 = vst [vmem:[#allocation2 + $0x68] sm:$0xff] %v2105_v2  ;;  %1765 = vmatprep.subr.bf16.mxu0 %v1997_v3  ;;  %v241_v13 = vld [vmem:[%s2209_s20 + $0x18] sm:$0xff]  ;;  %v239_v15 = vld [vmem:[%s2209_s20 + $0x8] sm:$0xff] }
  0x1b   : > { %236 = vst [vmem:[#allocation2 + $0x70] sm:$0xff] %v2105_v2  ;;  %237 = vst [vmem:[#allocation2 + $0x78] sm:$0xff] %v2105_v2  ;;  %309 = vrot.lane.b32.xlu1 %v274_v6, %s2106_s12  ;;  %305 = vrot.lane.b32.xlu0 %v272_v7, %s2106_s12  ;;  %v243_v16 = vld [vmem:[%s2209_s20 + $0x28] sm:$0xff]  ;;  %v278_v17 = vld [vmem:[%s2198_s11 + $0x38] sm:$0xff] }
  0x1c   : > { %257 = vst.msk [vmem:[#allocation2 + $0x10] sm:$0xff] %vm254_vm0, %v240_v11  ;;  %255 = vst.msk [vmem:[#allocation2] sm:$0xff] %vm254_vm0, %v238_v12  ;;  %v242_v18 = vld [vmem:[%s2209_s20 + $0x20] sm:$0xff]  ;;  %v277_v19 = vld [vmem:[%s2198_s11 + $0x30] sm:$0xff] }
  0x1d   : > { %1766 = vmatpush3.bf16.msra.mxu0 %v1997_v3  ;;  %258 = vst.msk [vmem:[#allocation2 + $0x18] sm:$0xff] %vm254_vm0, %v241_v13  ;;  %256 = vst.msk [vmem:[#allocation2 + $0x8] sm:$0xff] %vm254_vm0, %v239_v15  ;;  %v245_v21 = vld [vmem:[%s2209_s20 + $0x38] sm:$0xff]  ;;  %v244_v22 = vld [vmem:[%s2209_s20 + $0x30] sm:$0xff] }
  0x1e   : > { %1767 = vmatprep.subr.bf16.mxu0 %v1998_v8  ;;  %260 = vst.msk [vmem:[#allocation2 + $0x28] sm:$0xff] %vm254_vm0, %v243_v16  ;;  %259 = vst.msk [vmem:[#allocation2 + $0x20] sm:$0xff] %vm254_vm0, %v242_v18  ;;  %v247_v23 = vld [vmem:[%s2209_s20 + $0x48] sm:$0xff]  ;;  %v246_v24 = vld [vmem:[%s2209_s20 + $0x40] sm:$0xff] }
  0x1f   : > { %313 = vrot.lane.b32.xlu1 %v276_v9, %s2106_s12  ;;  %311 = vrot.lane.b32.xlu0 %v275_v10, %s2106_s12  ;;  %262 = vst.msk [vmem:[#allocation2 + $0x38] sm:$0xff] %vm254_vm0, %v245_v21  ;;  %261 = vst.msk [vmem:[#allocation2 + $0x30] sm:$0xff] %vm254_vm0, %v244_v22  ;;  %v249_v25 = vld [vmem:[%s2209_s20 + $0x58] sm:$0xff]  ;;  %v248_v26 = vld [vmem:[%s2209_s20 + $0x50] sm:$0xff] }
  0x20   : > { %264 = vst.msk [vmem:[#allocation2 + $0x48] sm:$0xff] %vm254_vm0, %v247_v23  ;;  %263 = vst.msk [vmem:[#allocation2 + $0x40] sm:$0xff] %vm254_vm0, %v246_v24  ;;  %v251_v27 = vld [vmem:[%s2209_s20 + $0x68] sm:$0xff]  ;;  %v279_v29 = vld [vmem:[%s2198_s11 + $0x40] sm:$0xff] }
  0x21   : > { %1768 = vmatpush3.bf16.msra.mxu0 %v1998_v8  ;;  %v280_v28 = vld [vmem:[%s2198_s11 + $0x48] sm:$0xff]  ;;  %266 = vst.msk [vmem:[#allocation2 + $0x58] sm:$0xff] %vm254_vm0, %v249_v25  ;;  %265 = vst.msk [vmem:[#allocation2 + $0x50] sm:$0xff] %vm254_vm0, %v248_v26  ;;  %v250_v30 = vld [vmem:[%s2209_s20 + $0x60] sm:$0xff] }
  0x22   : > { %1769 = vmatprep.subr.bf16.mxu0 %v1999_v14  ;;  %268 = vst.msk [vmem:[#allocation2 + $0x68] sm:$0xff] %vm254_vm0, %v251_v27  ;;  %267 = vst.msk [vmem:[#allocation2 + $0x60] sm:$0xff] %vm254_vm0, %v250_v30  ;;  %v253_v32 = vld [vmem:[%s2209_s20 + $0x78] sm:$0xff]  ;;  %v252_v33 = vld [vmem:[%s2209_s20 + $0x70] sm:$0xff]  ;;  %s2043_s20 = scalar_lea.vmem %s2465_s9, 2048 }
  0x23   : > { %317 = vrot.lane.b32.xlu1 %v278_v17, %s2106_s12  ;;  %315 = vrot.lane.b32.xlu0 %v277_v19, %s2106_s12  ;;  %v282_v34 = vld [vmem:[%s2198_s11 + $0x58] sm:$0xff]  ;;  %v281_v35 = vld [vmem:[%s2198_s11 + $0x50] sm:$0xff]  ;;  %270 = vst.msk [vmem:[#allocation2 + $0x78] sm:$0xff] %vm254_vm0, %v253_v32  ;;  %269 = vst.msk [vmem:[#allocation2 + $0x70] sm:$0xff] %vm254_vm0, %v252_v33  ;;  %p2044_p11 = scmp.ne.s32.totalorder %s2465_s9, %s2043_s20 }
  0x24   : > { %v2002_v36 = vld [vmem:[%s2513_s2] sm:$0xff]   ;;  %v284_v37 = vld [vmem:[%s2198_s11 + $0x68] sm:$0xff]  ;;  %v286_v39 = vld [vmem:[%s2198_s11 + $0x78] sm:$0xff] }
  0x25   : > { %1770 = vmatpush3.bf16.msra.mxu0 %v1999_v14  ;;  %v283_v38 = vld [vmem:[%s2198_s11 + $0x60] sm:$0xff]  ;;  %v285_v40 = vld [vmem:[%s2198_s11 + $0x70] sm:$0xff]  ;;  %v2003_v41 = vld [vmem:[%s2513_s2 + $0x78] sm:$0xff]   ;;  %p2045_p12 = pnand %p2044_p11, %p2172_p5  ;;  %s2107_s11 = smov [#allocation3]  }
  0x26   : > { %1771 = vmatprep.subr.bf16.mxu0 %v2000_v20  ;;  %v2004_v42 = vld [vmem:[%s2513_s2 + $0x70] sm:$0xff]   ;;  %1793 = vmatprep.subr.bf16.mxu1 %v2003_v41  ;;  %v2005_v43 = vld [vmem:[%s2513_s2 + $0x68] sm:$0xff]   ;;  %v2006_v44 = vld [vmem:[%s2513_s2 + $0x60] sm:$0xff]   ;;  %s2047_s22 = sshll.u32 %s2107_s11, 4  ;;  %s2048_s22 = int_to_ptr.vmem [resolvable:$false] %s2047_s22 }
  0x27   : > { %321 = vrot.lane.b32.xlu1 %v280_v28, %s2106_s12  ;;  %319 = vrot.lane.b32.xlu0 %v279_v29, %s2106_s12  ;;  %v2007_v45 = vld [vmem:[%s2513_s2 + $0x58] sm:$0xff]   ;;  %v2008_v22 = vld [vmem:[%s2513_s2 + $0x50] sm:$0xff]   ;;  %p2046_p13 = pneg %p2045_p12  ;;  %s2049_s23 = scalar_lea.vmem %s2048_s22, 4096 }
  0x28   : > { %1794 = vmatpush3.bf16.msra.mxu1 %v2003_v41  ;;  %v2009_v23 = vld [vmem:[%s2513_s2 + $0x48] sm:$0xff]   ;;  %v2010_v24 = vld [vmem:[%s2513_s2 + $0x40] sm:$0xff]   ;;  %v2011_v25 = vld [vmem:[%s2513_s2 + $0xb8] sm:$0xff]   ;;  %p2050_p0 = scmp.lt.s32.totalorder %s2465_s9, %s2048_s22  ;;  %p2051_p1 = scmp.lt.s32.totalorder %s2049_s23, %s2043_s20 }
  0x29   : > { %1772 = vmatpush3.bf16.msra.mxu0 %v2000_v20  ;;  %1795 = vmatprep.subr.bf16.mxu1 %v2004_v42  ;;  %v2012_v26 = vld [vmem:[%s2513_s2 + $0xb0] sm:$0xff]   ;;  %v2013_v27 = vld [vmem:[%s2513_s2 + $0xa8] sm:$0xff]   ;;  %v2014_v28 = vld [vmem:[%s2513_s2 + $0xa0] sm:$0xff]  }
  0x2a   : > { %1773 = vmatprep.subr.bf16.mxu0 %v2001_v31  ;;  %v2015_v29 = vld [vmem:[%s2513_s2 + $0x98] sm:$0xff]   ;;  %v1605_v32 = vld [vmem:[%s2514_s3] ss:$0 sm:$0xff]  ;;  %p2052_p2 = por %p2051_p1, %p2050_p0 }
  0x2b   : > { %325 = vrot.lane.b32.xlu1 %v282_v34, %s2106_s12  ;;  %323 = vrot.lane.b32.xlu0 %v281_v35, %s2106_s12 }
  0x2c   : > { %1796 = vmatpush3.bf16.msra.mxu1 %v2004_v42  ;;  %p2053_p3 = pnand %p2052_p2, %p2046_p13 }
  0x2d   : > { %1774 = vmatpush3.bf16.msra.mxu0 %v2001_v31  ;;  %1797 = vmatprep.subr.bf16.mxu1 %v2005_v43 }
  0x2e   : > { %1775 = vmatprep.subr.bf16.mxu0 %v2002_v36 }
  0x2f   : > { %329 = vrot.lane.b32.xlu1 %v284_v37, %s2106_s12  ;;  %327 = vrot.lane.b32.xlu0 %v283_v38, %s2106_s12 }
  0x30   : > { %1798 = vmatpush3.bf16.msra.mxu1 %v2005_v43 }
  0x31   : > { %1776 = vmatpush3.bf16.msra.mxu0 %v2002_v36  ;;  %1799 = vmatprep.subr.bf16.mxu1 %v2006_v44 }
  0x32   : > { %1825 = vmatprep.subr.bf16.mxu0 %v2011_v25 }
  0x33   : > { %333 = vrot.lane.b32.xlu1 %v286_v39, %s2106_s12  ;;  %331 = vrot.lane.b32.xlu0 %v285_v40, %s2106_s12 }
  0x34   : > { %1800 = vmatpush3.bf16.msra.mxu1 %v2006_v44 }
  0x35   : > { %1801 = vmatprep.subr.bf16.mxu1 %v2007_v45 }
  0x38   : > { %1802 = vmatpush3.bf16.msra.mxu1 %v2007_v45 }
  0x39   : > { %1803 = vmatprep.subr.bf16.mxu1 %v2008_v22 }
  0x3c   : > { %1804 = vmatpush3.bf16.msra.mxu1 %v2008_v22 }
  0x3d   : > { %1805 = vmatprep.subr.bf16.mxu1 %v2009_v23 }
  0x40   : > { %1806 = vmatpush3.bf16.msra.mxu1 %v2009_v23  ;;  %v2016_v23 = vld [vmem:[%s2513_s2 + $0x90] sm:$0xff]  }
  0x41   : > { %1807 = vmatprep.subr.bf16.mxu1 %v2010_v24 }
  0x44   : > { %1808 = vmatpush3.bf16.msra.mxu1 %v2010_v24  ;;  %v2017_v24 = vld [vmem:[%s2513_s2 + $0x88] sm:$0xff]  }
  0x89   : > { %v308_v46 = vpop.permute.xlu1 %307  ;;  %v304_v47 = vpop.permute.xlu0 %303 }
  0x8a   : > { %354 = vst.msk [vmem:[#allocation2 + $0x10] sm:$0xff] %vm351_vm1, %v308_v46  ;;  %352 = vst.msk [vmem:[#allocation2] sm:$0xff] %vm351_vm1, %v304_v47 }
  0x8d   : > { %v310_v48 = vpop.permute.xlu1 %309  ;;  %v306_v49 = vpop.permute.xlu0 %305 }
  0x8e   : > { %355 = vst.msk [vmem:[#allocation2 + $0x18] sm:$0xff] %vm351_vm1, %v310_v48  ;;  %353 = vst.msk [vmem:[#allocation2 + $0x8] sm:$0xff] %vm351_vm1, %v306_v49 }
  0x91   : > { %v314_v50 = vpop.permute.xlu1 %313  ;;  %v312_v51 = vpop.permute.xlu0 %311  ;;  %v368_v52 = vld [vmem:[#allocation2] sm:$0xff]  ;;  %v370_v56 = vld [vmem:[#allocation2 + $0x10] sm:$0xff] }
  0x92   : > { %357 = vst.msk [vmem:[#allocation2 + $0x28] sm:$0xff] %vm351_vm1, %v314_v50  ;;  %356 = vst.msk [vmem:[#allocation2 + $0x20] sm:$0xff] %vm351_vm1, %v312_v51 }
  0x95   : > { %v318_v53 = vpop.permute.xlu1 %317  ;;  %v316_v54 = vpop.permute.xlu0 %315  ;;  %v369_v55 = vld [vmem:[#allocation2 + $0x8] sm:$0xff]  ;;  %v371_v57 = vld [vmem:[#allocation2 + $0x18] sm:$0xff] }
  0x96   : > { %359 = vst.msk [vmem:[#allocation2 + $0x38] sm:$0xff] %vm351_vm1, %v318_v53  ;;  %358 = vst.msk [vmem:[#allocation2 + $0x30] sm:$0xff] %vm351_vm1, %v316_v54  ;;  %v401_v58 = vpack.c.bf16 %v369_v55, %v368_v52  ;;  %v402_v59 = vpack.c.bf16 %v371_v57, %v370_v56 }
  0x98   : > { %1777 = vmatprep.mubr.bf16.mxu0 %v401_v58 }
  0x99   : > { %1778 = vmatmul.mubr.bf16.vlgmr.msra.gmra.mxu0 %v402_v59  ;;  %v322_v60 = vpop.permute.xlu1 %321  ;;  %v320_v61 = vpop.permute.xlu0 %319  ;;  %v372_v62 = vld [vmem:[#allocation2 + $0x20] sm:$0xff]  ;;  %v373_v63 = vld [vmem:[#allocation2 + $0x28] sm:$0xff] }
  0x9a   : > { %361 = vst.msk [vmem:[#allocation2 + $0x48] sm:$0xff] %vm351_vm1, %v322_v60  ;;  %360 = vst.msk [vmem:[#allocation2 + $0x40] sm:$0xff] %vm351_vm1, %v320_v61  ;;  %v403_v0 = vpack.c.bf16 %v373_v63, %v372_v62  ;;  %1826 = vmatpush3.bf16.msra.mxu0 %v2011_v25  ;;  %v2018_v25 = vld [vmem:[%s2513_s2 + $0x80] sm:$0xff]  }
  0x9b   : > { %1827 = vmatprep.subr.bf16.mxu0 %v2012_v26 }
  0x9c   : > { %1781 = vmatprep.mubr.bf16.mxu0 %v403_v0 }
  0x9d   : > { %v326_v1 = vpop.permute.xlu1 %325  ;;  %v324_v2 = vpop.permute.xlu0 %323  ;;  %v374_v3 = vld [vmem:[#allocation2 + $0x30] sm:$0xff]  ;;  %v375_v4 = vld [vmem:[#allocation2 + $0x38] sm:$0xff] }
  0x9e   : > { %363 = vst.msk [vmem:[#allocation2 + $0x58] sm:$0xff] %vm351_vm1, %v326_v1  ;;  %362 = vst.msk [vmem:[#allocation2 + $0x50] sm:$0xff] %vm351_vm1, %v324_v2  ;;  %v404_v5 = vpack.c.bf16 %v375_v4, %v374_v3  ;;  %1828 = vmatpush3.bf16.msra.mxu0 %v2012_v26  ;;  %v2019_v26 = vld [vmem:[%s2513_s2 + $0xf8] sm:$0xff]  }
  0x9f   : > { %1829 = vmatprep.subr.bf16.mxu0 %v2013_v27  ;;  %1857 = vmatprep.subr.bf16.mxu1 %v2019_v26 }
  0xa1   : > { %1782 = vmatmul.mubr.bf16.gmra.mxu0 %v404_v5  ;;  %v330_v6 = vpop.permute.xlu1 %329  ;;  %v328_v7 = vpop.permute.xlu0 %327  ;;  %v376_v8 = vld [vmem:[#allocation2 + $0x40] sm:$0xff]  ;;  %v377_v9 = vld [vmem:[#allocation2 + $0x48] sm:$0xff] }
  0xa2   : > { %365 = vst.msk [vmem:[#allocation2 + $0x68] sm:$0xff] %vm351_vm1, %v330_v6  ;;  %364 = vst.msk [vmem:[#allocation2 + $0x60] sm:$0xff] %vm351_vm1, %v328_v7  ;;  %v405_v10 = vpack.c.bf16 %v377_v9, %v376_v8  ;;  %1830 = vmatpush3.bf16.msra.mxu0 %v2013_v27  ;;  %v2020_v27 = vld [vmem:[%s2513_s2 + $0xf0] sm:$0xff]  }
  0xa3   : > { %1831 = vmatprep.subr.bf16.mxu0 %v2014_v28 }
  0xa4   : > { %1785 = vmatprep.mubr.bf16.mxu0 %v405_v10 }
  0xa5   : > { %v334_v11 = vpop.permute.xlu1 %333  ;;  %v332_v12 = vpop.permute.xlu0 %331  ;;  %v378_v13 = vld [vmem:[#allocation2 + $0x50] sm:$0xff]  ;;  %v379_v14 = vld [vmem:[#allocation2 + $0x58] sm:$0xff] }
  0xa6   : > { %367 = vst.msk [vmem:[#allocation2 + $0x78] sm:$0xff] %vm351_vm1, %v334_v11  ;;  %366 = vst.msk [vmem:[#allocation2 + $0x70] sm:$0xff] %vm351_vm1, %v332_v12  ;;  %v406_v15 = vpack.c.bf16 %v379_v14, %v378_v13  ;;  %1832 = vmatpush3.bf16.msra.mxu0 %v2014_v28  ;;  %v2021_v28 = vld [vmem:[%s2513_s2 + $0xe8] sm:$0xff]  }
  0xa7   : > { %1833 = vmatprep.subr.bf16.mxu0 %v2015_v29 }
  0xa9   : > { %1786 = vmatmul.mubr.bf16.gmra.mxu0 %v406_v15  ;;  %v380_v16 = vld [vmem:[#allocation2 + $0x60] sm:$0xff]  ;;  %v381_v17 = vld [vmem:[#allocation2 + $0x68] sm:$0xff] }
  0xaa   : > { %v407_v18 = vpack.c.bf16 %v381_v17, %v380_v16  ;;  %1834 = vmatpush3.bf16.msra.mxu0 %v2015_v29  ;;  %v2022_v29 = vld [vmem:[%s2513_s2 + $0xe0] sm:$0xff]  }
  0xab   : > { %1835 = vmatprep.subr.bf16.mxu0 %v2016_v23 }
  0xac   : > { %1789 = vmatprep.mubr.bf16.mxu0 %v407_v18 }
  0xad   : > { %v382_v19 = vld [vmem:[#allocation2 + $0x70] sm:$0xff]  ;;  %v383_v20 = vld [vmem:[#allocation2 + $0x78] sm:$0xff] }
  0xae   : > { %v408_v21 = vpack.c.bf16 %v383_v20, %v382_v19  ;;  %1836 = vmatpush3.bf16.msra.mxu0 %v2016_v23 }
  0xaf   : > { %1837 = vmatprep.subr.bf16.mxu0 %v2017_v24 }
  0xb1   : > { %1790 = vmatmul.mubr.bf16.gmra.mxu0 %v408_v21 }
  0xb2   : > { %1838 = vmatpush3.bf16.msra.mxu0 %v2017_v24 }
  0xb3   : > { %1839 = vmatprep.subr.bf16.mxu0 %v2018_v25 }
  0xb6   : > { %1840 = vmatpush3.bf16.msra.mxu0 %v2018_v25  ;;  %v2025_v25 = vld [vmem:[%s2513_s2 + $0xc8] sm:$0xff]  }
 0x159   : > { %v1779_v30 = vpop.f32.mrf.mxu0 }
 0x15a   : > { %v504_v36 = vadd.f32 %v1779_v30, %v1605_v32  ;;  %v2023_v30 = vld [vmem:[%s2513_s2 + $0xd8] sm:$0xff]  }
 0x15b   : > { %v495_v31 = vpop.f32.mrf.mxu0 }
 0x15c   : > { %v496_v34 = vadd.f32 %v1605_v32, %v495_v31  ;;  %v560_v43 = vmax.f32 %v504_v36, 0.0  ;;  %v2024_v31 = vld [vmem:[%s2513_s2 + $0xd0] sm:$0xff]  }
 0x15d   : > { %v1780_v33 = vpop.f32.mrf.mxu0 }
 0x15e   : > { %v507_v35 = vadd.f32 %v1780_v33, %v1605_v32  ;;  %v558_v41 = vmax.f32 %v496_v34, 0.0  ;;  %v1614_v34 = vld [vmem:[%s2514_s3 + $0x1] ss:$0 sm:$0xff] }
 0x15f   : > { %v498_v37 = vpop.f32.mrf.mxu0 }
 0x160   : > { %v499_v38 = vadd.f32 %v1605_v32, %v498_v37  ;;  %v561_v39 = vmax.f32 %v507_v35, 0.0 }
 0x161   : > { %v1783_v40 = vpop.f32.mrf.mxu0 }
 0x162   : > { %v559_v42 = vmax.f32 %v499_v38, 0.0  ;;  %v592_v46 = vpack.c.bf16 %v561_v39, %v560_v43  ;;  %v520_v50 = vadd.f32 %v1783_v40, %v1605_v32 }
 0x163   : > { %v511_v44 = vpop.f32.mrf.mxu0 }
 0x164   : > { %v591_v45 = vpack.c.bf16 %v559_v42, %v558_v41  ;;  %v512_v48 = vadd.f32 %v1605_v32, %v511_v44  ;;  %v564_v57 = vmax.f32 %v520_v50, 0.0 }
 0x165   : > { %v1784_v47 = vpop.f32.mrf.mxu0 }
 0x166   : > { %v523_v49 = vadd.f32 %v1784_v47, %v1605_v32  ;;  %1809 = vmatprep.mubr.bf16.mxu1 %v591_v45  ;;  %v562_v55 = vmax.f32 %v512_v48, 0.0 }
 0x167   : > { %v514_v51 = vpop.f32.mrf.mxu0  ;;  %1810 = vmatmul.mubr.bf16.vlgmr.msra.gmra.mxu1 %v592_v46 }
 0x168   : > { %v515_v52 = vadd.f32 %v1605_v32, %v514_v51  ;;  %v565_v53 = vmax.f32 %v523_v49, 0.0  ;;  %1858 = vmatpush3.bf16.msra.mxu1 %v2019_v26  ;;  %v2026_v26 = vld [vmem:[%s2513_s2 + $0xc0] sm:$0xff]  }
 0x169   : > { %v1787_v54 = vpop.f32.mrf.mxu0  ;;  %1859 = vmatprep.subr.bf16.mxu1 %v2020_v27 }
 0x16a   : > { %v563_v56 = vmax.f32 %v515_v52, 0.0  ;;  %v594_v60 = vpack.c.bf16 %v565_v53, %v564_v57  ;;  %v536_v0 = vadd.f32 %v1787_v54, %v1605_v32 }
 0x16b   : > { %v527_v58 = vpop.f32.mrf.mxu0 }
 0x16c   : > { %v593_v59 = vpack.c.bf16 %v563_v56, %v562_v55  ;;  %v528_v62 = vadd.f32 %v1605_v32, %v527_v58  ;;  %v568_v7 = vmax.f32 %v536_v0, 0.0  ;;  %1860 = vmatpush3.bf16.msra.mxu1 %v2020_v27  ;;  %v2027_v27 = vld [vmem:[%s2513_s2 + $0x138] sm:$0xff]  }
 0x16d   : > { %v1788_v61 = vpop.f32.mrf.mxu0  ;;  %1861 = vmatprep.subr.bf16.mxu1 %v2021_v28  ;;  %1889 = vmatprep.subr.bf16.mxu0 %v2027_v27 }
 0x16e   : > { %v539_v63 = vadd.f32 %v1788_v61, %v1605_v32  ;;  %1813 = vmatprep.mubr.bf16.mxu1 %v593_v59  ;;  %v566_v5 = vmax.f32 %v528_v62, 0.0 }
 0x16f   : > { %v530_v1 = vpop.f32.mrf.mxu0  ;;  %1814 = vmatmul.mubr.bf16.gmra.mxu1 %v594_v60 }
 0x170   : > { %v531_v2 = vadd.f32 %v1605_v32, %v530_v1  ;;  %v569_v3 = vmax.f32 %v539_v63, 0.0  ;;  %1862 = vmatpush3.bf16.msra.mxu1 %v2021_v28  ;;  %v2028_v28 = vld [vmem:[%s2513_s2 + $0x130] sm:$0xff]  }
 0x171   : > { %v1791_v4 = vpop.f32.mrf.mxu0  ;;  %1863 = vmatprep.subr.bf16.mxu1 %v2022_v29 }
 0x172   : > { %v567_v6 = vmax.f32 %v531_v2, 0.0  ;;  %v596_v10 = vpack.c.bf16 %v569_v3, %v568_v7  ;;  %v552_v14 = vadd.f32 %v1791_v4, %v1605_v32 }
 0x173   : > { %v543_v8 = vpop.f32.mrf.mxu0 }
 0x174   : > { %v595_v9 = vpack.c.bf16 %v567_v6, %v566_v5  ;;  %v544_v12 = vadd.f32 %v1605_v32, %v543_v8  ;;  %v572_v20 = vmax.f32 %v552_v14, 0.0  ;;  %1864 = vmatpush3.bf16.msra.mxu1 %v2022_v29  ;;  %v2029_v29 = vld [vmem:[%s2513_s2 + $0x128] sm:$0xff]  }
 0x175   : > { %v1792_v11 = vpop.f32.mrf.mxu0  ;;  %1865 = vmatprep.subr.bf16.mxu1 %v2023_v30 }
 0x176   : > { %v555_v13 = vadd.f32 %v1792_v11, %v1605_v32  ;;  %1817 = vmatprep.mubr.bf16.mxu1 %v595_v9  ;;  %v570_v18 = vmax.f32 %v544_v12, 0.0 }
 0x177   : > { %v546_v15 = vpop.f32.mrf.mxu0  ;;  %1818 = vmatmul.mubr.bf16.gmra.mxu1 %v596_v10 }
 0x178   : > { %v547_v16 = vadd.f32 %v1605_v32, %v546_v15  ;;  %v573_v17 = vmax.f32 %v555_v13, 0.0  ;;  %1866 = vmatpush3.bf16.msra.mxu1 %v2023_v30  ;;  %v2030_v30 = vld [vmem:[%s2513_s2 + $0x120] sm:$0xff]  }
 0x179   : > { %1867 = vmatprep.subr.bf16.mxu1 %v2024_v31 }
 0x17a   : > { %v571_v19 = vmax.f32 %v547_v16, 0.0  ;;  %v598_v22 = vpack.c.bf16 %v573_v17, %v572_v20 }
 0x17c   : > { %v597_v21 = vpack.c.bf16 %v571_v19, %v570_v18  ;;  %1868 = vmatpush3.bf16.msra.mxu1 %v2024_v31  ;;  %v2031_v31 = vld [vmem:[%s2513_s2 + $0x118] sm:$0xff]  }
 0x17d   : > { %1869 = vmatprep.subr.bf16.mxu1 %v2025_v25 }
 0x17e   : > { %1821 = vmatprep.mubr.bf16.mxu1 %v597_v21 }
 0x17f   : > { %1822 = vmatmul.mubr.bf16.gmra.mxu1 %v598_v22 }
 0x180   : > { %1870 = vmatpush3.bf16.msra.mxu1 %v2025_v25 }
 0x181   : > { %1871 = vmatprep.subr.bf16.mxu1 %v2026_v26 }
 0x184   : > { %1872 = vmatpush3.bf16.msra.mxu1 %v2026_v26 }
 0x227   : > { %v1811_v32 = vpop.f32.mrf.mxu1 }
 0x228   : > { %v694_v38 = vadd.f32 %v1811_v32, %v1614_v34 }
 0x229   : > { %v685_v33 = vpop.f32.mrf.mxu1 }
 0x22a   : > { %v686_v36 = vadd.f32 %v1614_v34, %v685_v33  ;;  %v750_v45 = vmax.f32 %v694_v38, 0.0 }
 0x22b   : > { %v1812_v35 = vpop.f32.mrf.mxu1 }
 0x22c   : > { %v697_v37 = vadd.f32 %v1812_v35, %v1614_v34  ;;  %v748_v43 = vmax.f32 %v686_v36, 0.0  ;;  %v1623_v35 = vld [vmem:[%s2514_s3 + $0x2] ss:$0 sm:$0xff] }
 0x22d   : > { %v688_v39 = vpop.f32.mrf.mxu1 }
 0x22e   : > { %v689_v40 = vadd.f32 %v1614_v34, %v688_v39  ;;  %v751_v41 = vmax.f32 %v697_v37, 0.0 }
 0x22f   : > { %v1815_v42 = vpop.f32.mrf.mxu1 }
 0x230   : > { %v749_v44 = vmax.f32 %v689_v40, 0.0  ;;  %v782_v48 = vpack.c.bf16 %v751_v41, %v750_v45  ;;  %v710_v52 = vadd.f32 %v1815_v42, %v1614_v34 }
 0x231   : > { %v701_v46 = vpop.f32.mrf.mxu1 }
 0x232   : > { %v781_v47 = vpack.c.bf16 %v749_v44, %v748_v43  ;;  %v702_v50 = vadd.f32 %v1614_v34, %v701_v46  ;;  %v754_v59 = vmax.f32 %v710_v52, 0.0 }
 0x233   : > { %v1816_v49 = vpop.f32.mrf.mxu1 }
 0x234   : > { %v713_v51 = vadd.f32 %v1816_v49, %v1614_v34  ;;  %1841 = vmatprep.mubr.bf16.mxu0 %v781_v47  ;;  %v752_v57 = vmax.f32 %v702_v50, 0.0 }
 0x235   : > { %v704_v53 = vpop.f32.mrf.mxu1  ;;  %1842 = vmatmul.mubr.bf16.vlgmr.msra.gmra.mxu0 %v782_v48 }
 0x236   : > { %v705_v54 = vadd.f32 %v1614_v34, %v704_v53  ;;  %v755_v55 = vmax.f32 %v713_v51, 0.0  ;;  %1890 = vmatpush3.bf16.msra.mxu0 %v2027_v27 }
 0x237   : > { %v1819_v56 = vpop.f32.mrf.mxu1  ;;  %1891 = vmatprep.subr.bf16.mxu0 %v2028_v28 }
 0x238   : > { %v753_v58 = vmax.f32 %v705_v54, 0.0  ;;  %v784_v62 = vpack.c.bf16 %v755_v55, %v754_v59  ;;  %v726_v2 = vadd.f32 %v1819_v56, %v1614_v34 }
 0x239   : > { %v717_v60 = vpop.f32.mrf.mxu1 }
 0x23a   : > { %v783_v61 = vpack.c.bf16 %v753_v58, %v752_v57  ;;  %v718_v0 = vadd.f32 %v1614_v34, %v717_v60  ;;  %v758_v9 = vmax.f32 %v726_v2, 0.0  ;;  %1892 = vmatpush3.bf16.msra.mxu0 %v2028_v28 }
 0x23b   : > { %v1820_v63 = vpop.f32.mrf.mxu1  ;;  %1893 = vmatprep.subr.bf16.mxu0 %v2029_v29 }
 0x23c   : > { %v729_v1 = vadd.f32 %v1820_v63, %v1614_v34  ;;  %1845 = vmatprep.mubr.bf16.mxu0 %v783_v61  ;;  %v756_v7 = vmax.f32 %v718_v0, 0.0 }
 0x23d   : > { %v720_v3 = vpop.f32.mrf.mxu1  ;;  %1846 = vmatmul.mubr.bf16.gmra.mxu0 %v784_v62 }
 0x23e   : > { %v721_v4 = vadd.f32 %v1614_v34, %v720_v3  ;;  %v759_v5 = vmax.f32 %v729_v1, 0.0  ;;  %1894 = vmatpush3.bf16.msra.mxu0 %v2029_v29 }
 0x23f   : > { %v1823_v6 = vpop.f32.mrf.mxu1  ;;  %1895 = vmatprep.subr.bf16.mxu0 %v2030_v30 }
 0x240   : > { %v757_v8 = vmax.f32 %v721_v4, 0.0  ;;  %v786_v12 = vpack.c.bf16 %v759_v5, %v758_v9  ;;  %v742_v16 = vadd.f32 %v1823_v6, %v1614_v34  ;;  %v2032_v9 = vld [vmem:[%s2513_s2 + $0x110] sm:$0xff]  }
 0x241   : > { %v733_v10 = vpop.f32.mrf.mxu1 }
 0x242   : > { %v785_v11 = vpack.c.bf16 %v757_v8, %v756_v7  ;;  %v734_v14 = vadd.f32 %v1614_v34, %v733_v10  ;;  %v762_v22 = vmax.f32 %v742_v16, 0.0  ;;  %1896 = vmatpush3.bf16.msra.mxu0 %v2030_v30  ;;  %v2033_v10 = vld [vmem:[%s2513_s2 + $0x108] sm:$0xff]   ;;  %v2039_v16 = vld [vmem:[%s2513_s2 + $0x158] sm:$0xff]  }
 0x243   : > { %v1824_v13 = vpop.f32.mrf.mxu1  ;;  %1897 = vmatprep.subr.bf16.mxu0 %v2031_v31 }
 0x244   : > { %v745_v15 = vadd.f32 %v1824_v13, %v1614_v34  ;;  %1849 = vmatprep.mubr.bf16.mxu0 %v785_v11  ;;  %v760_v20 = vmax.f32 %v734_v14, 0.0  ;;  %v2034_v11 = vld [vmem:[%s2513_s2 + $0x100] sm:$0xff]   ;;  %v2036_v13 = vld [vmem:[%s2513_s2 + $0x170] sm:$0xff]   ;;  %v2037_v14 = vld [vmem:[%s2513_s2 + $0x168] sm:$0xff]  }
 0x245   : > { %v736_v17 = vpop.f32.mrf.mxu1  ;;  %1850 = vmatmul.mubr.bf16.gmra.mxu0 %v786_v12  ;;  %v2035_v12 = vld [vmem:[%s2513_s2 + $0x178] sm:$0xff]  }
 0x246   : > { %v737_v18 = vadd.f32 %v1614_v34, %v736_v17  ;;  %v763_v19 = vmax.f32 %v745_v15, 0.0  ;;  %1898 = vmatpush3.bf16.msra.mxu0 %v2031_v31  ;;  %1921 = vmatprep.subr.bf16.mxu1 %v2035_v12  ;;  %v2038_v15 = vld [vmem:[%s2513_s2 + $0x160] sm:$0xff]  }
 0x247   : > { %1899 = vmatprep.subr.bf16.mxu0 %v2032_v9 }
 0x248   : > { %v761_v21 = vmax.f32 %v737_v18, 0.0  ;;  %v788_v24 = vpack.c.bf16 %v763_v19, %v762_v22  ;;  %v1632_v19 = vld [vmem:[%s2514_s3 + $0x3] ss:$0 sm:$0xff] }
 0x24a   : > { %v787_v23 = vpack.c.bf16 %v761_v21, %v760_v20  ;;  %1900 = vmatpush3.bf16.msra.mxu0 %v2032_v9 }
 0x24b   : > { %1901 = vmatprep.subr.bf16.mxu0 %v2033_v10 }
 0x24c   : > { %1853 = vmatprep.mubr.bf16.mxu0 %v787_v23 }
 0x24d   : > { %1854 = vmatmul.mubr.bf16.gmra.mxu0 %v788_v24 }
 0x24e   : > { %1902 = vmatpush3.bf16.msra.mxu0 %v2033_v10  ;;  %v2040_v10 = vld [vmem:[%s2513_s2 + $0x150] sm:$0xff]  }
 0x24f   : > { %1903 = vmatprep.subr.bf16.mxu0 %v2034_v11 }
 0x252   : > { %1904 = vmatpush3.bf16.msra.mxu0 %v2034_v11  ;;  %v2041_v11 = vld [vmem:[%s2513_s2 + $0x148] sm:$0xff]  }
 0x2f5   : > { %v1843_v32 = vpop.f32.mrf.mxu0 }
 0x2f6   : > { %v884_v40 = vadd.f32 %v1843_v32, %v1623_v35 }
 0x2f7   : > { %v875_v33 = vpop.f32.mrf.mxu0 }
 0x2f8   : > { %v876_v38 = vadd.f32 %v1623_v35, %v875_v33 }
 0x2f9   : > { %v1844_v34 = vpop.f32.mrf.mxu0 }
 0x2fa   : > { %v887_v36 = vadd.f32 %v1844_v34, %v1623_v35 }
 0x2fb   : > { %v878_v37 = vpop.f32.mrf.mxu0 }
 0x2fc   : > { %v879_v39 = vadd.f32 %v1623_v35, %v878_v37  ;;  %v956_v43 = vpack.c.bf16 %v887_v36, %v884_v40 }
 0x2fd   : > { %v1847_v41 = vpop.f32.mrf.mxu0 }
 0x2fe   : > { %v955_v42 = vpack.c.bf16 %v879_v39, %v876_v38  ;;  %v900_v50 = vadd.f32 %v1847_v41, %v1623_v35 }
 0x2ff   : > { %v891_v44 = vpop.f32.mrf.mxu0 }
 0x300   : > { %1873 = vmatprep.mubr.bf16.mxu1 %v955_v42  ;;  %v892_v48 = vadd.f32 %v1623_v35, %v891_v44 }
 0x301   : > { %v1848_v45 = vpop.f32.mrf.mxu0  ;;  %1874 = vmatmul.mubr.bf16.vlgmr.msra.gmra.mxu1 %v956_v43 }
 0x302   : > { %v903_v46 = vadd.f32 %v1848_v45, %v1623_v35  ;;  %1922 = vmatpush3.bf16.msra.mxu1 %v2035_v12  ;;  %v2042_v12 = vld [vmem:[%s2513_s2 + $0x140] sm:$0xff]  }
 0x303   : > { %v894_v47 = vpop.f32.mrf.mxu0  ;;  %1923 = vmatprep.subr.bf16.mxu1 %v2036_v13 }
 0x304   : > { %v895_v49 = vadd.f32 %v1623_v35, %v894_v47  ;;  %v958_v53 = vpack.c.bf16 %v903_v46, %v900_v50 }
 0x305   : > { %v1851_v51 = vpop.f32.mrf.mxu0 }
 0x306   : > { %v957_v52 = vpack.c.bf16 %v895_v49, %v892_v48  ;;  %v916_v60 = vadd.f32 %v1851_v51, %v1623_v35  ;;  %1924 = vmatpush3.bf16.msra.mxu1 %v2036_v13 }
 0x307   : > { %v907_v54 = vpop.f32.mrf.mxu0  ;;  %1925 = vmatprep.subr.bf16.mxu1 %v2037_v14 }
 0x308   : > { %1877 = vmatprep.mubr.bf16.mxu1 %v957_v52  ;;  %v908_v58 = vadd.f32 %v1623_v35, %v907_v54 }
 0x309   : > { %v1852_v55 = vpop.f32.mrf.mxu0  ;;  %1878 = vmatmul.mubr.bf16.gmra.mxu1 %v958_v53 }
 0x30a   : > { %v919_v56 = vadd.f32 %v1852_v55, %v1623_v35  ;;  %1926 = vmatpush3.bf16.msra.mxu1 %v2037_v14 }
 0x30b   : > { %v910_v57 = vpop.f32.mrf.mxu0  ;;  %1927 = vmatprep.subr.bf16.mxu1 %v2038_v15 }
 0x30c   : > { %v911_v59 = vadd.f32 %v1623_v35, %v910_v57  ;;  %v960_v63 = vpack.c.bf16 %v919_v56, %v916_v60 }
 0x30d   : > { %v1855_v61 = vpop.f32.mrf.mxu0 }
 0x30e   : > { %v959_v62 = vpack.c.bf16 %v911_v59, %v908_v58  ;;  %v932_v6 = vadd.f32 %v1855_v61, %v1623_v35  ;;  %1928 = vmatpush3.bf16.msra.mxu1 %v2038_v15  ;;  %v1641_v15 = vld [vmem:[%s2514_s3 + $0x4] ss:$0 sm:$0xff] }
 0x30f   : > { %v923_v0 = vpop.f32.mrf.mxu0  ;;  %1929 = vmatprep.subr.bf16.mxu1 %v2039_v16 }
 0x310   : > { %1881 = vmatprep.mubr.bf16.mxu1 %v959_v62  ;;  %v924_v4 = vadd.f32 %v1623_v35, %v923_v0 }
 0x311   : > { %v1856_v1 = vpop.f32.mrf.mxu0  ;;  %1882 = vmatmul.mubr.bf16.gmra.mxu1 %v960_v63 }
 0x312   : > { %v935_v2 = vadd.f32 %v1856_v1, %v1623_v35  ;;  %1930 = vmatpush3.bf16.msra.mxu1 %v2039_v16 }
 0x313   : > { %v926_v3 = vpop.f32.mrf.mxu0  ;;  %1931 = vmatprep.subr.bf16.mxu1 %v2040_v10 }
 0x314   : > { %v927_v5 = vadd.f32 %v1623_v35, %v926_v3  ;;  %v962_v8 = vpack.c.bf16 %v935_v2, %v932_v6 }
 0x316   : > { %v961_v7 = vpack.c.bf16 %v927_v5, %v924_v4  ;;  %1932 = vmatpush3.bf16.msra.mxu1 %v2040_v10 }
 0x317   : > { %1933 = vmatprep.subr.bf16.mxu1 %v2041_v11 }
 0x318   : > { %1885 = vmatprep.mubr.bf16.mxu1 %v961_v7 }
 0x319   : > { %1886 = vmatmul.mubr.bf16.gmra.mxu1 %v962_v8 }
 0x31a   : > { %1934 = vmatpush3.bf16.msra.mxu1 %v2041_v11 }
 0x31b   : > { %1935 = vmatprep.subr.bf16.mxu1 %v2042_v12 }
 0x31e   : > { %1936 = vmatpush3.bf16.msra.mxu1 %v2042_v12 }
 0x3c1   : > { %v1875_v17 = vpop.f32.mrf.mxu1 }
 0x3c2   : > { %v1058_v23 = vadd.f32 %v1875_v17, %v1632_v19 }
 0x3c3   : > { %v1049_v18 = vpop.f32.mrf.mxu1 }
 0x3c4   : > { %v1050_v21 = vadd.f32 %v1632_v19, %v1049_v18  ;;  %v1114_v30 = vmax.f32 %v1058_v23, 0.0 }
 0x3c5   : > { %v1876_v20 = vpop.f32.mrf.mxu1 }
 0x3c6   : > { %v1061_v22 = vadd.f32 %v1876_v20, %v1632_v19  ;;  %v1112_v28 = vmax.f32 %v1050_v21, 0.0 }
 0x3c7   : > { %v1052_v24 = vpop.f32.mrf.mxu1 }
 0x3c8   : > { %v1053_v25 = vadd.f32 %v1632_v19, %v1052_v24  ;;  %v1115_v26 = vmax.f32 %v1061_v22, 0.0 }
 0x3c9   : > { %v1879_v27 = vpop.f32.mrf.mxu1 }
 0x3ca   : > { %v1113_v29 = vmax.f32 %v1053_v25, 0.0  ;;  %v1146_v33 = vpack.c.bf16 %v1115_v26, %v1114_v30  ;;  %v1074_v37 = vadd.f32 %v1879_v27, %v1632_v19 }
 0x3cb   : > { %v1065_v31 = vpop.f32.mrf.mxu1 }
 0x3cc   : > { %v1145_v32 = vpack.c.bf16 %v1113_v29, %v1112_v28  ;;  %v1066_v35 = vadd.f32 %v1632_v19, %v1065_v31  ;;  %v1118_v44 = vmax.f32 %v1074_v37, 0.0 }
 0x3cd   : > { %v1880_v34 = vpop.f32.mrf.mxu1 }
 0x3ce   : > { %v1077_v36 = vadd.f32 %v1880_v34, %v1632_v19  ;;  %1905 = vmatprep.mubr.bf16.mxu0 %v1145_v32  ;;  %v1116_v42 = vmax.f32 %v1066_v35, 0.0 }
 0x3cf   : > { %v1068_v38 = vpop.f32.mrf.mxu1  ;;  %1906 = vmatmul.mubr.bf16.vlgmr.msra.gmra.mxu0 %v1146_v33 }
 0x3d0   : > { %v1069_v39 = vadd.f32 %v1632_v19, %v1068_v38  ;;  %v1119_v40 = vmax.f32 %v1077_v36, 0.0 }
 0x3d1   : > { %v1883_v41 = vpop.f32.mrf.mxu1 }
 0x3d2   : > { %v1117_v43 = vmax.f32 %v1069_v39, 0.0  ;;  %v1148_v47 = vpack.c.bf16 %v1119_v40, %v1118_v44  ;;  %v1090_v51 = vadd.f32 %v1883_v41, %v1632_v19 }
 0x3d3   : > { %v1081_v45 = vpop.f32.mrf.mxu1 }
 0x3d4   : > { %v1147_v46 = vpack.c.bf16 %v1117_v43, %v1116_v42  ;;  %v1082_v49 = vadd.f32 %v1632_v19, %v1081_v45  ;;  %v1122_v58 = vmax.f32 %v1090_v51, 0.0 }
 0x3d5   : > { %v1884_v48 = vpop.f32.mrf.mxu1 }
 0x3d6   : > { %v1093_v50 = vadd.f32 %v1884_v48, %v1632_v19  ;;  %1909 = vmatprep.mubr.bf16.mxu0 %v1147_v46  ;;  %v1120_v56 = vmax.f32 %v1082_v49, 0.0 }
 0x3d7   : > { %v1084_v52 = vpop.f32.mrf.mxu1  ;;  %1910 = vmatmul.mubr.bf16.gmra.mxu0 %v1148_v47 }
 0x3d8   : > { %v1085_v53 = vadd.f32 %v1632_v19, %v1084_v52  ;;  %v1123_v54 = vmax.f32 %v1093_v50, 0.0 }
 0x3d9   : > { %v1887_v55 = vpop.f32.mrf.mxu1 }
 0x3da   : > { %v1121_v57 = vmax.f32 %v1085_v53, 0.0  ;;  %v1150_v61 = vpack.c.bf16 %v1123_v54, %v1122_v58  ;;  %v1106_v1 = vadd.f32 %v1887_v55, %v1632_v19 }
 0x3db   : > { %v1097_v59 = vpop.f32.mrf.mxu1 }
 0x3dc   : > { %v1149_v60 = vpack.c.bf16 %v1121_v57, %v1120_v56  ;;  %v1098_v63 = vadd.f32 %v1632_v19, %v1097_v59  ;;  %v1126_v7 = vmax.f32 %v1106_v1, 0.0 }
 0x3dd   : > { %v1888_v62 = vpop.f32.mrf.mxu1 }
 0x3de   : > { %v1109_v0 = vadd.f32 %v1888_v62, %v1632_v19  ;;  %1913 = vmatprep.mubr.bf16.mxu0 %v1149_v60  ;;  %v1124_v5 = vmax.f32 %v1098_v63, 0.0 }
 0x3df   : > { %v1100_v2 = vpop.f32.mrf.mxu1  ;;  %1914 = vmatmul.mubr.bf16.gmra.mxu0 %v1150_v61 }
 0x3e0   : > { %v1101_v3 = vadd.f32 %v1632_v19, %v1100_v2  ;;  %v1127_v4 = vmax.f32 %v1109_v0, 0.0 }
 0x3e2   : > { %v1125_v6 = vmax.f32 %v1101_v3, 0.0  ;;  %v1152_v9 = vpack.c.bf16 %v1127_v4, %v1126_v7 }
 0x3e4   : > { %v1151_v8 = vpack.c.bf16 %v1125_v6, %v1124_v5  ;;  %v1650_v6 = vld [vmem:[%s2514_s3 + $0x5] ss:$0 sm:$0xff] }
 0x3e6   : > { %1917 = vmatprep.mubr.bf16.mxu0 %v1151_v8 }
 0x3e7   : > { %1918 = vmatmul.mubr.bf16.gmra.mxu0 %v1152_v9 }
 0x48f   : > { %v1907_v13 = vpop.f32.mrf.mxu0 }
 0x490   : > { %v1248_v19 = vadd.f32 %v1907_v13, %v1641_v15 }
 0x491   : > { %v1239_v14 = vpop.f32.mrf.mxu0 }
 0x492   : > { %v1240_v17 = vadd.f32 %v1641_v15, %v1239_v14  ;;  %v1304_v26 = vmax.f32 %v1248_v19, 0.0 }
 0x493   : > { %v1908_v16 = vpop.f32.mrf.mxu0 }
 0x494   : > { %v1251_v18 = vadd.f32 %v1908_v16, %v1641_v15  ;;  %v1302_v24 = vmax.f32 %v1240_v17, 0.0 }
 0x495   : > { %v1242_v20 = vpop.f32.mrf.mxu0 }
 0x496   : > { %v1243_v21 = vadd.f32 %v1641_v15, %v1242_v20  ;;  %v1305_v22 = vmax.f32 %v1251_v18, 0.0 }
 0x497   : > { %v1911_v23 = vpop.f32.mrf.mxu0 }
 0x498   : > { %v1303_v25 = vmax.f32 %v1243_v21, 0.0  ;;  %v1336_v29 = vpack.c.bf16 %v1305_v22, %v1304_v26  ;;  %v1264_v33 = vadd.f32 %v1911_v23, %v1641_v15 }
 0x499   : > { %v1255_v27 = vpop.f32.mrf.mxu0 }
 0x49a   : > { %v1335_v28 = vpack.c.bf16 %v1303_v25, %v1302_v24  ;;  %v1256_v31 = vadd.f32 %v1641_v15, %v1255_v27  ;;  %v1308_v40 = vmax.f32 %v1264_v33, 0.0 }
 0x49b   : > { %v1912_v30 = vpop.f32.mrf.mxu0 }
 0x49c   : > { %v1267_v32 = vadd.f32 %v1912_v30, %v1641_v15  ;;  %1937 = vmatprep.mubr.bf16.mxu1 %v1335_v28  ;;  %v1306_v38 = vmax.f32 %v1256_v31, 0.0 }
 0x49d   : > { %v1258_v34 = vpop.f32.mrf.mxu0  ;;  %1938 = vmatmul.mubr.bf16.vlgmr.msra.gmra.mxu1 %v1336_v29 }
 0x49e   : > { %v1259_v35 = vadd.f32 %v1641_v15, %v1258_v34  ;;  %v1309_v36 = vmax.f32 %v1267_v32, 0.0 }
 0x49f   : > { %v1915_v37 = vpop.f32.mrf.mxu0 }
 0x4a0   : > { %v1307_v39 = vmax.f32 %v1259_v35, 0.0  ;;  %v1338_v43 = vpack.c.bf16 %v1309_v36, %v1308_v40  ;;  %v1280_v47 = vadd.f32 %v1915_v37, %v1641_v15 }
 0x4a1   : > { %v1271_v41 = vpop.f32.mrf.mxu0 }
 0x4a2   : > { %v1337_v42 = vpack.c.bf16 %v1307_v39, %v1306_v38  ;;  %v1272_v45 = vadd.f32 %v1641_v15, %v1271_v41  ;;  %v1312_v54 = vmax.f32 %v1280_v47, 0.0 }
 0x4a3   : > { %v1916_v44 = vpop.f32.mrf.mxu0 }
 0x4a4   : > { %v1283_v46 = vadd.f32 %v1916_v44, %v1641_v15  ;;  %1941 = vmatprep.mubr.bf16.mxu1 %v1337_v42  ;;  %v1310_v52 = vmax.f32 %v1272_v45, 0.0 }
 0x4a5   : > { %v1274_v48 = vpop.f32.mrf.mxu0  ;;  %1942 = vmatmul.mubr.bf16.gmra.mxu1 %v1338_v43 }
 0x4a6   : > { %v1275_v49 = vadd.f32 %v1641_v15, %v1274_v48  ;;  %v1313_v50 = vmax.f32 %v1283_v46, 0.0 }
 0x4a7   : > { %v1919_v51 = vpop.f32.mrf.mxu0 }
 0x4a8   : > { %v1311_v53 = vmax.f32 %v1275_v49, 0.0  ;;  %v1340_v57 = vpack.c.bf16 %v1313_v50, %v1312_v54  ;;  %v1296_v61 = vadd.f32 %v1919_v51, %v1641_v15 }
 0x4a9   : > { %v1287_v55 = vpop.f32.mrf.mxu0 }
 0x4aa   : > { %v1339_v56 = vpack.c.bf16 %v1311_v53, %v1310_v52  ;;  %v1288_v59 = vadd.f32 %v1641_v15, %v1287_v55  ;;  %v1316_v3 = vmax.f32 %v1296_v61, 0.0 }
 0x4ab   : > { %v1920_v58 = vpop.f32.mrf.mxu0 }
 0x4ac   : > { %v1299_v60 = vadd.f32 %v1920_v58, %v1641_v15  ;;  %1945 = vmatprep.mubr.bf16.mxu1 %v1339_v56  ;;  %v1314_v1 = vmax.f32 %v1288_v59, 0.0 }
 0x4ad   : > { %v1290_v62 = vpop.f32.mrf.mxu0  ;;  %1946 = vmatmul.mubr.bf16.gmra.mxu1 %v1340_v57 }
 0x4ae   : > { %v1291_v63 = vadd.f32 %v1641_v15, %v1290_v62  ;;  %v1317_v0 = vmax.f32 %v1299_v60, 0.0 }
 0x4b0   : > { %v1315_v2 = vmax.f32 %v1291_v63, 0.0  ;;  %v1342_v5 = vpack.c.bf16 %v1317_v0, %v1316_v3 }
 0x4b2   : > { %v1341_v4 = vpack.c.bf16 %v1315_v2, %v1314_v1 }
 0x4b4   : > { %1949 = vmatprep.mubr.bf16.mxu1 %v1341_v4 }
 0x4b5   : > { %1950 = vmatmul.mubr.bf16.gmra.mxu1 %v1342_v5 }
 0x55d   : > { %v1939_v7 = vpop.f32.mrf.mxu1 }
 0x55e   : > { %v1438_v8 = vadd.f32 %v1939_v7, %v1650_v6 }
 0x55f   : > { %v1429_v9 = vpop.f32.mrf.mxu1 }
 0x560   : > { %1494 = vst [vmem:[%s2441_s7 + $0x10] sm:$0xff] %v1438_v8  ;;  %v1430_v10 = vadd.f32 %v1650_v6, %v1429_v9 }
 0x561   : > { %v1940_v11 = vpop.f32.mrf.mxu1 }
 0x562   : > { %1492 = vst [vmem:[%s2441_s7] sm:$0xff] %v1430_v10  ;;  %v1441_v12 = vadd.f32 %v1940_v11, %v1650_v6 }
 0x563   : > { %v1432_v13 = vpop.f32.mrf.mxu1 }
 0x564   : > { %1495 = vst [vmem:[%s2441_s7 + $0x18] sm:$0xff] %v1441_v12  ;;  %v1433_v14 = vadd.f32 %v1650_v6, %v1432_v13 }
 0x565   : > { %v1943_v15 = vpop.f32.mrf.mxu1 }
 0x566   : > { %1493 = vst [vmem:[%s2441_s7 + $0x8] sm:$0xff] %v1433_v14  ;;  %v1454_v16 = vadd.f32 %v1943_v15, %v1650_v6 }
 0x567   : > { %v1445_v17 = vpop.f32.mrf.mxu1 }
 0x568   : > { %1498 = vst [vmem:[%s2441_s7 + $0x30] sm:$0xff] %v1454_v16  ;;  %v1446_v18 = vadd.f32 %v1650_v6, %v1445_v17 }
 0x569   : > { %v1944_v19 = vpop.f32.mrf.mxu1 }
 0x56a   : > { %1496 = vst [vmem:[%s2441_s7 + $0x20] sm:$0xff] %v1446_v18  ;;  %v1457_v20 = vadd.f32 %v1944_v19, %v1650_v6 }
 0x56b   : > { %v1448_v21 = vpop.f32.mrf.mxu1 }
 0x56c   : > { %1499 = vst [vmem:[%s2441_s7 + $0x38] sm:$0xff] %v1457_v20  ;;  %v1449_v22 = vadd.f32 %v1650_v6, %v1448_v21 }
 0x56d   : > { %v1947_v23 = vpop.f32.mrf.mxu1 }
 0x56e   : > { %1497 = vst [vmem:[%s2441_s7 + $0x28] sm:$0xff] %v1449_v22  ;;  %v1470_v24 = vadd.f32 %v1947_v23, %v1650_v6 }
 0x56f   : > { %v1461_v25 = vpop.f32.mrf.mxu1 }
 0x570   : > { %1502 = vst [vmem:[%s2441_s7 + $0x50] sm:$0xff] %v1470_v24  ;;  %v1462_v26 = vadd.f32 %v1650_v6, %v1461_v25 }
 0x571   : > { %v1948_v27 = vpop.f32.mrf.mxu1 }
 0x572   : > { %1500 = vst [vmem:[%s2441_s7 + $0x40] sm:$0xff] %v1462_v26  ;;  %v1473_v28 = vadd.f32 %v1948_v27, %v1650_v6 }
 0x573   : > { %v1464_v29 = vpop.f32.mrf.mxu1 }
 0x574   : > { %1503 = vst [vmem:[%s2441_s7 + $0x58] sm:$0xff] %v1473_v28  ;;  %v1465_v30 = vadd.f32 %v1650_v6, %v1464_v29 }
 0x575   : > { %v1951_v31 = vpop.f32.mrf.mxu1 }
 0x576   : > { %1501 = vst [vmem:[%s2441_s7 + $0x48] sm:$0xff] %v1465_v30  ;;  %v1486_v32 = vadd.f32 %v1951_v31, %v1650_v6 }
 0x577   : > { %v1477_v33 = vpop.f32.mrf.mxu1 }
 0x578   : > { %1506 = vst [vmem:[%s2441_s7 + $0x70] sm:$0xff] %v1486_v32  ;;  %v1478_v34 = vadd.f32 %v1650_v6, %v1477_v33 }
 0x579   : > { %v1952_v35 = vpop.f32.mrf.mxu1 }
 0x57a   : > { %1504 = vst [vmem:[%s2441_s7 + $0x60] sm:$0xff] %v1478_v34  ;;  %v1489_v36 = vadd.f32 %v1952_v35, %v1650_v6 }
 0x57b   : > { %v1480_v37 = vpop.f32.mrf.mxu1 }
 0x57c   : > { %1507 = vst [vmem:[%s2441_s7 + $0x78] sm:$0xff] %v1489_v36  ;;  %v1481_v38 = vadd.f32 %v1650_v6, %v1480_v37 }
 0x57e   : > { %1505 = vst [vmem:[%s2441_s7 + $0x68] sm:$0xff] %v1481_v38 }
 0x57f   : > { %2056 = shalt.err (!%p2053_p3)
}
 0x580   : > { %s2057_s27 = scalar_lea.hbm %s2462_s14, 2048  ;;  %s2061_s30 = scalar_lea.hbm %s2515_s4, 4096 }
 0x581   : > { %p2058_p4 = scmp.ne.s32.totalorder %s2462_s14, %s2057_s27  ;;  %p2062_p9 = scmp.lt.s32.totalorder %s2462_s14, %s2515_s4 }
 0x582   : > { %p2063_p10 = scmp.lt.s32.totalorder %s2061_s30, %s2057_s27 }
 0x583   : > { %p2059_p7 = pnand %p2058_p4, %p2172_p5 }
 0x584   : > { %p2064_p11 = por %p2063_p10, %p2062_p9 }
 0x585   : > { %p2060_p8 = pneg %p2059_p7 }
 0x587   : > { %p2065_p12 = pnand %p2064_p11, %p2060_p8 }
 0x589   : > { %2068 = shalt.err (!%p2065_p12)
}
 0x58a   : > { %s2108_s7 = smov 128  }
 0x58b   : > { %1953 = dma.vmem_to_hbm [thread:$0]  (%p2172_p5), %s2465_s9, 2048, %s2462_s14, %s2470_s19, %s2108_s7, %s2108_s7, %s2106_s12  }
 0x58c PF: > { %p1959_p13 = scmp.ge.s32.totalorder %s2103_s18, 2  ;;  %s1537_s8 = sand.u32 1, %s2091_s15  }
 0x58d   : > { %s1538_s10 = scalar_lea.sflag [#allocation4], %s1537_s8 }
 0x58e   : > { %p1956_p0 = pnand %p1959_p13, %p2176_p6 }
 0x590   : > { %p1957_p1 = pneg %p1956_p0 }
 0x592   : > { %2086 = dma.done.wait (%p1957_p1), %s1538_s10, 2048  }
 0x593   : > { %2088 = vsyncadd (%p1957_p1), %s1538_s10, 4294965248  ;;  %p14_p2 = scmp.ge.s32.totalorder %s2159_s21, 4   ;;  %s2518_s15 = smov %s2095_s16 }
 0x594   : > { %s2519_s16 = smov %s2099_s17  ;;  %s2520_s17 = smov %s2170_s24 }
 0x595   : > { %s2521_s18 = smov %s2159_s21  ;;  %16 = sbr.rel (!%p14_p2) target bundleno = 3 (0x3), region = 74 }
 0x59a   :  { %1543 = vsyncpa [#allocation4], 1 }
 0x59b   :  { %1545 = vsyncpa [#allocation4 + $0x1], 1 }

</bundles_post_ra>
